<compile_context>
chip_gen: v7x
topology: tpu7x:2x2x1
jax: 0.10.0
libtpu: 0.0.40
codegen_flags: <defaults>
</compile_context>

<pallas_src>
import math

import jax
import jax.numpy as jnp
from jax.experimental import pallas as pl
from jax.experimental.pallas import tpu as pltpu  # noqa: F401 (kept for TPU-specific tuning)

# ---------------- config (small, consistent with hMLP_stem) ----------------
B = 2
IN_CHANS = 3
H = W = 32                  # must be divisible by 16 (the overall patch size)
EMBED_DIM = 128             # lane-dense output (multiple of 128)
D4 = EMBED_DIM // 4         # stem hidden width
PH, PW = H // 16, W // 16   # patch grid
NUM_PATCHES = PH * PW
BN_EPS = 1e-5               # nn.BatchNorm / SyncBatchNorm default
SQRT_2 = math.sqrt(2.0)


def _gelu_exact(x):
    # nn.GELU default = exact erf formulation (goes to the EUP).
    return 0.5 * x * (1.0 + jax.lax.erf(x * (1.0 / SQRT_2)))


def stem_kernel(x1_ref,                     # (16*B*P, Cin*16)  rows (q1, q2, b, ph, pw)
                w1_ref, s1_ref, t1_ref,     # (Cin*16, D4), (1, D4), (1, D4)
                w2_ref, s2_ref, t2_ref,     # (4, D4, D4), (1, D4), (1, D4)
                w3_ref, s3_ref, t3_ref,     # (4, D4, D),  (1, D),  (1, D)
                o_ref):                     # (B*P, D)
    # ---- stage 1: conv1 (4x4 / stride 4) == one matmul over every 4x4 cell ----
    a1 = jnp.dot(x1_ref[...], w1_ref[...], preferred_element_type=jnp.float32)
    a1 = _gelu_exact(a1 * s1_ref[...] + t1_ref[...])       # (16*B*P, D4)

    # ---- stage 2: conv2 (2x2 / stride 2) == sum over 4 spatial offsets (q1) ----
    # each a1 block is a contiguous, 8-sublane-aligned row slice (no lane shuffles).
    m2 = a1.shape[0] // 4
    a2 = jnp.dot(a1[0:m2], w2_ref[0], preferred_element_type=jnp.float32)
    for q1 in range(1, 4):
        a2 = a2 + jnp.dot(a1[q1 * m2:(q1 + 1) * m2], w2_ref[q1],
                          preferred_element_type=jnp.float32)
    a2 = _gelu_exact(a2 * s2_ref[...] + t2_ref[...])        # (4*B*P, D4) rows (q2, b, ph, pw)

    # ---- stage 3: conv3 (2x2 / stride 2, out=EMBED_DIM); BN only, no GELU ----
    m3 = a2.shape[0] // 4
    a3 = jnp.dot(a2[0:m3], w3_ref[0], preferred_element_type=jnp.float32)
    for q2 in range(1, 4):
        a3 = a3 + jnp.dot(a2[q2 * m3:(q2 + 1) * m3], w3_ref[q2],
                          preferred_element_type=jnp.float32)
    a3 = a3 * s3_ref[...] + t3_ref[...]                     # (B*P, D) rows (b, ph, pw)

    o_ref[...] = a3.astype(o_ref.dtype)                     # lane-dense (last dim 128)


def _fold_bn(conv_b, gamma, beta, mean, var):
    """Eval-mode BN applied after (conv + bias) folded to per-channel (scale, bias)."""
    scale = gamma * jax.lax.rsqrt(var + BN_EPS)
    bias = (conv_b - mean) * scale + beta
    return scale.reshape(1, -1), bias.reshape(1, -1)


def hmlp_stem_forward(x, p):
    """x: (B, IN_CHANS, H, W) f32, torch-layout params p -> (B, NUM_PATCHES, EMBED_DIM)."""
    Bx, Cin, Hx, Wx = x.shape
    ph, pw = Hx // 16, Wx // 16

    # space-to-depth: rows ordered (q1h, q1w, q2h, q2w, b, ph, pw); cols (c, rh, rw).
    xr = x.reshape(Bx, Cin, ph, 2, 2, 4, pw, 2, 2, 4)
    #              b   c   ph q2h q1h rh pw q2w q1w rw
    xt = xr.transpose(4, 8, 3, 7, 0, 2, 6, 1, 5, 9)
    x1 = xt.reshape(16 * Bx * ph * pw, Cin * 16)

    # conv weights -> matmul layout (layout plumbing, done once on the host/XLA side)
    w1 = p["w1"].reshape(D4, Cin * 16).T                         # (Cin*16, D4), cols (c,rh,rw)
    w2 = p["w2"].transpose(2, 3, 1, 0).reshape(4, D4, D4)        # [(dh,dw)] -> (D4_in, D4_out)
    w3 = p["w3"].transpose(2, 3, 1, 0).reshape(4, D4, EMBED_DIM)

    s1, t1 = _fold_bn(p["b1"], p["g1"], p["beta1"], p["m1"], p["v1"])
    s2, t2 = _fold_bn(p["b2"], p["g2"], p["beta2"], p["m2"], p["v2"])
    s3, t3 = _fold_bn(p["b3"], p["g3"], p["beta3"], p["m3"], p["v3"])

    # Single invocation (no grid): everything (<100 KB) lives in VMEM for the whole call.
    out = pl.pallas_call(
        stem_kernel,
        out_shape=jax.ShapeDtypeStruct((Bx * ph * pw, EMBED_DIM), jnp.float32),
    )(x1, w1, s1, t1, w2, s2, t2, w3, s3, t3)

    # rows are ordered (b, ph, pw) == PyTorch flatten(2).transpose(1,2) token order
    return out.reshape(Bx, ph * pw, EMBED_DIM)


# ------------------------- plain-JAX reference (for check) --------------------
def hmlp_stem_reference(x, p):
    def conv(z, w, b, stride):
        out = jax.lax.conv_general_dilated(
            z, w, window_strides=(stride, stride), padding="VALID",
            dimension_numbers=("NCHW", "OIHW", "NCHW"))
        return out + b[None, :, None, None]

    def bn(z, g, be, m, v):
        inv = jax.lax.rsqrt(v + BN_EPS)
        return (z - m[None, :, None, None]) * (g * inv)[None, :, None, None] \
            + be[None, :, None, None]

    def gelu(z):
        return 0.5 * z * (1.0 + jax.lax.erf(z / SQRT_2))

    z = gelu(bn(conv(x, p["w1"], p["b1"], 4), p["g1"], p["beta1"], p["m1"], p["v1"]))
    z = gelu(bn(conv(z, p["w2"], p["b2"], 2), p["g2"], p["beta2"], p["m2"], p["v2"]))
    z = bn(conv(z, p["w3"], p["b3"], 2), p["g3"], p["beta3"], p["m3"], p["v3"])
    Bx, D, Hp, Wp = z.shape
    return z.reshape(Bx, D, Hp * Wp).transpose(0, 2, 1)


def make_params(key):
    ks = jax.random.split(key, 9)
    s = 0.05

    def bn_params(k, c):
        k1, k2, k3, k4 = jax.random.split(k, 4)
        return (0.5 + jax.random.uniform(k1, (c,), jnp.float32),      # gamma
                0.1 * jax.random.normal(k2, (c,), jnp.float32),       # beta
                0.1 * jax.random.normal(k3, (c,), jnp.float32),       # running mean
                0.5 + jax.random.uniform(k4, (c,), jnp.float32))      # running var (>0)

    g1, beta1, m1, v1 = bn_params(ks[3], D4)
    g2, beta2, m2, v2 = bn_params(ks[4], D4)
    g3, beta3, m3, v3 = bn_params(ks[5], EMBED_DIM)
    return {
        "w1": s * jax.random.normal(ks[0], (D4, IN_CHANS, 4, 4), jnp.float32),
        "b1": s * jax.random.normal(ks[6], (D4,), jnp.float32),
        "w2": s * jax.random.normal(ks[1], (D4, D4, 2, 2), jnp.float32),
        "b2": s * jax.random.normal(ks[7], (D4,), jnp.float32),
        "w3": s * jax.random.normal(ks[2], (EMBED_DIM, D4, 2, 2), jnp.float32),
        "b3": s * jax.random.normal(ks[8], (EMBED_DIM,), jnp.float32),
        "g1": g1, "beta1": beta1, "m1": m1, "v1": v1,
        "g2": g2, "beta2": beta2, "m2": m2, "v2": v2,
        "g3": g3, "beta3": beta3, "m3": m3, "v3": v3,
    }


if __name__ == "__main__":
    key = jax.random.PRNGKey(0)
    kx, kp = jax.random.split(key)
    x = jax.random.normal(kx, (B, IN_CHANS, H, W), jnp.float32)
    params = make_params(kp)

    out = hmlp_stem_forward(x, params)
    out = jax.block_until_ready(out)

    ref = hmlp_stem_reference(x, params)
    assert out.shape == (B, NUM_PATCHES, EMBED_DIM)
    err = jnp.max(jnp.abs(out - ref))
    assert jnp.allclose(out, ref, atol=1e-3, rtol=1e-3), f"mismatch vs reference, max abs err={err}"

    print("KERNEL_OK")
</pallas_src>

<mosaic_0001>
module attributes {stable_mosaic.version = 11 : i64} {
  func.func @stem_kernel(%arg0: memref<128x48xf32, #tpu.memory_space<vmem>>, %arg1: memref<48x32xf32, #tpu.memory_space<vmem>>, %arg2: memref<1x32xf32, #tpu.memory_space<vmem>>, %arg3: memref<1x32xf32, #tpu.memory_space<vmem>>, %arg4: memref<4x32x32xf32, #tpu.memory_space<vmem>>, %arg5: memref<1x32xf32, #tpu.memory_space<vmem>>, %arg6: memref<1x32xf32, #tpu.memory_space<vmem>>, %arg7: memref<4x32x128xf32, #tpu.memory_space<vmem>>, %arg8: memref<1x128xf32, #tpu.memory_space<vmem>>, %arg9: memref<1x128xf32, #tpu.memory_space<vmem>>, %arg10: memref<8x128xf32, #tpu.memory_space<vmem>>) attributes {dimension_semantics = [], scalar_prefetch = 0 : i64, scratch_operands = 0 : i64, tpu.core_type = #tpu.core_type<tc>} {
    %c0 = arith.constant 0 : index
    %c0_0 = arith.constant 0 : index
    %0 = vector.load %arg0[%c0, %c0_0] : memref<128x48xf32, #tpu.memory_space<vmem>>, vector<128x48xf32>
    %c0_1 = arith.constant 0 : index
    %c0_2 = arith.constant 0 : index
    %1 = vector.load %arg1[%c0_1, %c0_2] : memref<48x32xf32, #tpu.memory_space<vmem>>, vector<48x32xf32>
    %cst = arith.constant dense<0.000000e+00> : vector<128x32xf32>
    %2 = tpu.matmul %0, %1, %cst {dimension_numbers = #tpu.dot_dimension_numbers<[1], [0], [0], [1], [0, 0, 1, 1], [], []>} : vector<128x48xf32>, vector<48x32xf32>, vector<128x32xf32> -> vector<128x32xf32>
    %c0_3 = arith.constant 0 : index
    %c0_4 = arith.constant 0 : index
    %3 = vector.load %arg2[%c0_3, %c0_4] : memref<1x32xf32, #tpu.memory_space<vmem>>, vector<1x32xf32>
    %4 = vector.broadcast %3 : vector<1x32xf32> to vector<128x32xf32>
    %5 = arith.mulf %2, %4 : vector<128x32xf32>
    %c0_5 = arith.constant 0 : index
    %c0_6 = arith.constant 0 : index
    %6 = vector.load %arg3[%c0_5, %c0_6] : memref<1x32xf32, #tpu.memory_space<vmem>>, vector<1x32xf32>
    %7 = vector.broadcast %6 : vector<1x32xf32> to vector<128x32xf32>
    %8 = arith.addf %5, %7 : vector<128x32xf32>
    %cst_7 = arith.constant 5.000000e-01 : f32
    %9 = vector.broadcast %cst_7 : f32 to vector<128x32xf32>
    %10 = arith.mulf %9, %8 : vector<128x32xf32>
    %cst_8 = arith.constant 0.707106769 : f32
    %11 = vector.broadcast %cst_8 : f32 to vector<128x32xf32>
    %12 = arith.mulf %8, %11 : vector<128x32xf32>
    %13 = math.erf %12 : vector<128x32xf32>
    %cst_9 = arith.constant 1.000000e+00 : f32
    %14 = vector.broadcast %cst_9 : f32 to vector<128x32xf32>
    %15 = arith.addf %14, %13 : vector<128x32xf32>
    %16 = arith.mulf %10, %15 : vector<128x32xf32>
    %17 = vector.extract_strided_slice %16 {offsets = [0, 0], sizes = [32, 32], strides = [1, 1]} : vector<128x32xf32> to vector<32x32xf32>
    %c0_10 = arith.constant 0 : index
    %c0_11 = arith.constant 0 : index
    %c0_12 = arith.constant 0 : index
    %18 = vector.load %arg4[%c0_10, %c0_11, %c0_12] : memref<4x32x32xf32, #tpu.memory_space<vmem>>, vector<1x32x32xf32>
    %19 = vector.shape_cast %18 : vector<1x32x32xf32> to vector<32x32xf32>
    %cst_13 = arith.constant dense<0.000000e+00> : vector<32x32xf32>
    %20 = tpu.matmul %17, %19, %cst_13 {dimension_numbers = #tpu.dot_dimension_numbers<[1], [0], [0], [1], [0, 0, 1, 1], [], []>} : vector<32x32xf32>, vector<32x32xf32>, vector<32x32xf32> -> vector<32x32xf32>
    %21 = vector.extract_strided_slice %16 {offsets = [32, 0], sizes = [32, 32], strides = [1, 1]} : vector<128x32xf32> to vector<32x32xf32>
    %c1 = arith.constant 1 : index
    %c0_14 = arith.constant 0 : index
    %c0_15 = arith.constant 0 : index
    %22 = vector.load %arg4[%c1, %c0_14, %c0_15] : memref<4x32x32xf32, #tpu.memory_space<vmem>>, vector<1x32x32xf32>
    %23 = vector.shape_cast %22 : vector<1x32x32xf32> to vector<32x32xf32>
    %cst_16 = arith.constant dense<0.000000e+00> : vector<32x32xf32>
    %24 = tpu.matmul %21, %23, %cst_16 {dimension_numbers = #tpu.dot_dimension_numbers<[1], [0], [0], [1], [0, 0, 1, 1], [], []>} : vector<32x32xf32>, vector<32x32xf32>, vector<32x32xf32> -> vector<32x32xf32>
    %25 = arith.addf %20, %24 : vector<32x32xf32>
    %26 = vector.extract_strided_slice %16 {offsets = [64, 0], sizes = [32, 32], strides = [1, 1]} : vector<128x32xf32> to vector<32x32xf32>
    %c2 = arith.constant 2 : index
    %c0_17 = arith.constant 0 : index
    %c0_18 = arith.constant 0 : index
    %27 = vector.load %arg4[%c2, %c0_17, %c0_18] : memref<4x32x32xf32, #tpu.memory_space<vmem>>, vector<1x32x32xf32>
    %28 = vector.shape_cast %27 : vector<1x32x32xf32> to vector<32x32xf32>
    %cst_19 = arith.constant dense<0.000000e+00> : vector<32x32xf32>
    %29 = tpu.matmul %26, %28, %cst_19 {dimension_numbers = #tpu.dot_dimension_numbers<[1], [0], [0], [1], [0, 0, 1, 1], [], []>} : vector<32x32xf32>, vector<32x32xf32>, vector<32x32xf32> -> vector<32x32xf32>
    %30 = arith.addf %25, %29 : vector<32x32xf32>
    %31 = vector.extract_strided_slice %16 {offsets = [96, 0], sizes = [32, 32], strides = [1, 1]} : vector<128x32xf32> to vector<32x32xf32>
    %c3 = arith.constant 3 : index
    %c0_20 = arith.constant 0 : index
    %c0_21 = arith.constant 0 : index
    %32 = vector.load %arg4[%c3, %c0_20, %c0_21] : memref<4x32x32xf32, #tpu.memory_space<vmem>>, vector<1x32x32xf32>
    %33 = vector.shape_cast %32 : vector<1x32x32xf32> to vector<32x32xf32>
    %cst_22 = arith.constant dense<0.000000e+00> : vector<32x32xf32>
    %34 = tpu.matmul %31, %33, %cst_22 {dimension_numbers = #tpu.dot_dimension_numbers<[1], [0], [0], [1], [0, 0, 1, 1], [], []>} : vector<32x32xf32>, vector<32x32xf32>, vector<32x32xf32> -> vector<32x32xf32>
    %35 = arith.addf %30, %34 : vector<32x32xf32>
    %c0_23 = arith.constant 0 : index
    %c0_24 = arith.constant 0 : index
    %36 = vector.load %arg5[%c0_23, %c0_24] : memref<1x32xf32, #tpu.memory_space<vmem>>, vector<1x32xf32>
    %37 = vector.broadcast %36 : vector<1x32xf32> to vector<32x32xf32>
    %38 = arith.mulf %35, %37 : vector<32x32xf32>
    %c0_25 = arith.constant 0 : index
    %c0_26 = arith.constant 0 : index
    %39 = vector.load %arg6[%c0_25, %c0_26] : memref<1x32xf32, #tpu.memory_space<vmem>>, vector<1x32xf32>
    %40 = vector.broadcast %39 : vector<1x32xf32> to vector<32x32xf32>
    %41 = arith.addf %38, %40 : vector<32x32xf32>
    %cst_27 = arith.constant 5.000000e-01 : f32
    %42 = vector.broadcast %cst_27 : f32 to vector<32x32xf32>
    %43 = arith.mulf %42, %41 : vector<32x32xf32>
    %cst_28 = arith.constant 0.707106769 : f32
    %44 = vector.broadcast %cst_28 : f32 to vector<32x32xf32>
    %45 = arith.mulf %41, %44 : vector<32x32xf32>
    %46 = math.erf %45 : vector<32x32xf32>
    %cst_29 = arith.constant 1.000000e+00 : f32
    %47 = vector.broadcast %cst_29 : f32 to vector<32x32xf32>
    %48 = arith.addf %47, %46 : vector<32x32xf32>
    %49 = arith.mulf %43, %48 : vector<32x32xf32>
    %50 = vector.extract_strided_slice %49 {offsets = [0, 0], sizes = [8, 32], strides = [1, 1]} : vector<32x32xf32> to vector<8x32xf32>
    %c0_30 = arith.constant 0 : index
    %c0_31 = arith.constant 0 : index
    %c0_32 = arith.constant 0 : index
    %51 = vector.load %arg7[%c0_30, %c0_31, %c0_32] : memref<4x32x128xf32, #tpu.memory_space<vmem>>, vector<1x32x128xf32>
    %52 = vector.shape_cast %51 : vector<1x32x128xf32> to vector<32x128xf32>
    %cst_33 = arith.constant dense<0.000000e+00> : vector<8x128xf32>
    %53 = tpu.matmul %50, %52, %cst_33 {dimension_numbers = #tpu.dot_dimension_numbers<[1], [0], [0], [1], [0, 0, 1, 1], [], []>} : vector<8x32xf32>, vector<32x128xf32>, vector<8x128xf32> -> vector<8x128xf32>
    %54 = vector.extract_strided_slice %49 {offsets = [8, 0], sizes = [8, 32], strides = [1, 1]} : vector<32x32xf32> to vector<8x32xf32>
    %c1_34 = arith.constant 1 : index
    %c0_35 = arith.constant 0 : index
    %c0_36 = arith.constant 0 : index
    %55 = vector.load %arg7[%c1_34, %c0_35, %c0_36] : memref<4x32x128xf32, #tpu.memory_space<vmem>>, vector<1x32x128xf32>
    %56 = vector.shape_cast %55 : vector<1x32x128xf32> to vector<32x128xf32>
    %cst_37 = arith.constant dense<0.000000e+00> : vector<8x128xf32>
    %57 = tpu.matmul %54, %56, %cst_37 {dimension_numbers = #tpu.dot_dimension_numbers<[1], [0], [0], [1], [0, 0, 1, 1], [], []>} : vector<8x32xf32>, vector<32x128xf32>, vector<8x128xf32> -> vector<8x128xf32>
    %58 = arith.addf %53, %57 : vector<8x128xf32>
    %59 = vector.extract_strided_slice %49 {offsets = [16, 0], sizes = [8, 32], strides = [1, 1]} : vector<32x32xf32> to vector<8x32xf32>
    %c2_38 = arith.constant 2 : index
    %c0_39 = arith.constant 0 : index
    %c0_40 = arith.constant 0 : index
    %60 = vector.load %arg7[%c2_38, %c0_39, %c0_40] : memref<4x32x128xf32, #tpu.memory_space<vmem>>, vector<1x32x128xf32>
    %61 = vector.shape_cast %60 : vector<1x32x128xf32> to vector<32x128xf32>
    %cst_41 = arith.constant dense<0.000000e+00> : vector<8x128xf32>
    %62 = tpu.matmul %59, %61, %cst_41 {dimension_numbers = #tpu.dot_dimension_numbers<[1], [0], [0], [1], [0, 0, 1, 1], [], []>} : vector<8x32xf32>, vector<32x128xf32>, vector<8x128xf32> -> vector<8x128xf32>
    %63 = arith.addf %58, %62 : vector<8x128xf32>
    %64 = vector.extract_strided_slice %49 {offsets = [24, 0], sizes = [8, 32], strides = [1, 1]} : vector<32x32xf32> to vector<8x32xf32>
    %c3_42 = arith.constant 3 : index
    %c0_43 = arith.constant 0 : index
    %c0_44 = arith.constant 0 : index
    %65 = vector.load %arg7[%c3_42, %c0_43, %c0_44] : memref<4x32x128xf32, #tpu.memory_space<vmem>>, vector<1x32x128xf32>
    %66 = vector.shape_cast %65 : vector<1x32x128xf32> to vector<32x128xf32>
    %cst_45 = arith.constant dense<0.000000e+00> : vector<8x128xf32>
    %67 = tpu.matmul %64, %66, %cst_45 {dimension_numbers = #tpu.dot_dimension_numbers<[1], [0], [0], [1], [0, 0, 1, 1], [], []>} : vector<8x32xf32>, vector<32x128xf32>, vector<8x128xf32> -> vector<8x128xf32>
    %68 = arith.addf %63, %67 : vector<8x128xf32>
    %c0_46 = arith.constant 0 : index
    %c0_47 = arith.constant 0 : index
    %69 = vector.load %arg8[%c0_46, %c0_47] : memref<1x128xf32, #tpu.memory_space<vmem>>, vector<1x128xf32>
    %70 = vector.broadcast %69 : vector<1x128xf32> to vector<8x128xf32>
    %71 = arith.mulf %68, %70 : vector<8x128xf32>
    %c0_48 = arith.constant 0 : index
    %c0_49 = arith.constant 0 : index
    %72 = vector.load %arg9[%c0_48, %c0_49] : memref<1x128xf32, #tpu.memory_space<vmem>>, vector<1x128xf32>
    %73 = vector.broadcast %72 : vector<1x128xf32> to vector<8x128xf32>
    %74 = arith.addf %71, %73 : vector<8x128xf32>
    %c0_50 = arith.constant 0 : index
    %c0_51 = arith.constant 0 : index
    %75 = vector.load %arg10[%c0_50, %c0_51] : memref<8x128xf32, #tpu.memory_space<vmem>>, vector<8x128xf32>
    tpu.vector_store %arg10[%c0_50, %c0_51], %74 {strides = array<i32>} : memref<8x128xf32, #tpu.memory_space<vmem>>, vector<8x128xf32>,
    return
  }
}

</mosaic_0001>

<bundles_post_ra>
// kernel: tpu_custom_call.1
= control target key start
LH: loop header
LB: loop body
LE: loop exit
PB: predicated region body
PF: predicated region fallthrough
CT: control target
= control target key end

     0   :  { %vm58_vm0 = vcmask 392192   ;;  %s1992_s0 = inlined_call_operand.vmem [shape: f32[128,48], index: 0, kind: input, shape index: {}]   ;;  %s1993_s1 = inlined_call_operand.vmem [shape: f32[48,32], index: 1, kind: input, shape index: {}]   ;;  %s1994_s2 = inlined_call_operand.vmem [shape: f32[1,32], index: 2, kind: input, shape index: {}]   ;;  %s1995_s3 = inlined_call_operand.vmem [shape: f32[1,32], index: 3, kind: input, shape index: {}]   ;;  %s1996_s4 = inlined_call_operand.vmem [shape: f32[4,32,32], index: 4, kind: input, shape index: {}]   ;;  %s1997_s5 = inlined_call_operand.vmem [shape: f32[1,32], index: 5, kind: input, shape index: {}]   ;;  %s1998_s6 = inlined_call_operand.vmem [shape: f32[1,32], index: 6, kind: input, shape index: {}]   ;;  %s1999_s7 = inlined_call_operand.vmem [shape: f32[4,32,128], index: 7, kind: input, shape index: {}]   ;;  %s2000_s8 = inlined_call_operand.vmem [shape: f32[1,128], index: 8, kind: input, shape index: {}]   ;;  %s2001_s9 = inlined_call_operand.vmem [shape: f32[1,128], index: 9, kind: input, shape index: {}]   ;;  %s2002_s10 = inlined_call_operand.hbm [shape: f32[8,128], index: 10, kind: output, shape index: {}]  }
   0x1   :  { %v52_v0 = vld [vmem:[%s1993_s1] sm:$0xff]  ;;  %v53_v1 = vld [vmem:[%s1993_s1 + $0x8] sm:$0xff]  ;;  %v54_v2 = vld [vmem:[%s1993_s1 + $0x10] sm:$0xff] }
   0x2   :  { %v1456_v3 = vpack.c.bf16 %v53_v1, %v52_v0  ;;  %v55_v4 = vld [vmem:[%s1993_s1 + $0x18] sm:$0xff]  ;;  %v56_v6 = vld [vmem:[%s1993_s1 + $0x20] sm:$0xff]  ;;  %v57_v7 = vld [vmem:[%s1993_s1 + $0x28] sm:$0xff] }
   0x3   :  { %v1460_v5 = vpack.c.bf16 %v55_v4, %v54_v2  ;;  %v36_v8 = vld [vmem:[%s1992_s0] sm:$0xff]  ;;  %v1464_v9 = vpack.c.bf16 %v57_v7, %v56_v6 }
   0x4   :  { %1457 = vmatprep.subr.bf16.mxu0 %v1456_v3  ;;  %1332 = vmatprep.mubr.msk.f32.mxu0 %vm58_vm0, %v36_v8 }
   0x5   :  { %1459 = vmatpush3.bf16.msra.mxu0 %v1456_v3 }
   0x6   :  { %1461 = vmatprep.subr.bf16.mxu0 %v1460_v5 }
   0x7   :  { %15 = vsyncpa [#allocation3], 0  ;;  %v37_v10 = vld [vmem:[%s1992_s0 + $0x8] sm:$0xff]  ;;  %v38_v11 = vld [vmem:[%s1992_s0 + $0x10] sm:$0xff]  ;;  %vm387_vm1 = vcmask 261120   ;;  %vm1610_vm2 = vmmov 0  }
   0x8   :  { %v39_v12 = vld [vmem:[%s1992_s0 + $0x18] sm:$0xff]  ;;  %v40_v13 = vld [vmem:[%s1992_s0 + $0x20] sm:$0xff]  ;;  %v41_v14 = vld [vmem:[%s1992_s0 + $0x28] sm:$0xff]  ;;  %s1612_s16 = smov [#allocation2]  }
   0x9   :  { %1463 = vmatpush3.bf16.msra.mxu0 %v1460_v5  ;;  %v42_v15 = vld [vmem:[%s1992_s0 + $0x30] sm:$0xff]  ;;  %v43_v16 = vld [vmem:[%s1992_s0 + $0x38] sm:$0xff]  ;;  %v44_v17 = vld [vmem:[%s1992_s0 + $0x40] sm:$0xff] }
   0xa   :  { %1465 = vmatprep.subr.bf16.mxu0 %v1464_v9  ;;  %v45_v18 = vld [vmem:[%s1992_s0 + $0x48] sm:$0xff]  ;;  %v46_v19 = vld [vmem:[%s1992_s0 + $0x50] sm:$0xff]  ;;  %v47_v20 = vld [vmem:[%s1992_s0 + $0x58] sm:$0xff] }
   0xb   :  { %v48_v21 = vld [vmem:[%s1992_s0 + $0x60] sm:$0xff]  ;;  %v49_v22 = vld [vmem:[%s1992_s0 + $0x68] sm:$0xff]  ;;  %v50_v23 = vld [vmem:[%s1992_s0 + $0x70] sm:$0xff] }
   0xc   :  { %v51_v24 = vld [vmem:[%s1992_s0 + $0x78] sm:$0xff]  ;;  %v378_v25 = vld [vmem:[%s1996_s4] sm:$0xff]  ;;  %v379_v26 = vld [vmem:[%s1996_s4 + $0x8] sm:$0xff] }
   0xd   :  { %1467 = vmatpush3.bf16.msra.mxu0 %v1464_v9  ;;  %v1476_v27 = vpack.c.bf16 %v379_v26, %v378_v25  ;;  %v380_v28 = vld [vmem:[%s1996_s4 + $0x10] sm:$0xff]  ;;  %v381_v29 = vld [vmem:[%s1996_s4 + $0x18] sm:$0xff]  ;;  %v1198_v31 = vld [vmem:[%s1996_s4 + $0x20] sm:$0xff] }
   0xe   :  { %v1480_v30 = vpack.c.bf16 %v381_v29, %v380_v28  ;;  %v1199_v32 = vld [vmem:[%s1996_s4 + $0x28] sm:$0xff]  ;;  %v1200_v34 = vld [vmem:[%s1996_s4 + $0x30] sm:$0xff]  ;;  %v1201_v35 = vld [vmem:[%s1996_s4 + $0x38] sm:$0xff] }
   0xf   :  { %1477 = vmatprep.subr.bf16.mxu1 %v1476_v27  ;;  %v1468_v33 = vpack.c.bf16 %v1199_v32, %v1198_v31  ;;  %v1472_v36 = vpack.c.bf16 %v1201_v35, %v1200_v34  ;;  %v1210_v37 = vld [vmem:[%s1996_s4 + $0x40] sm:$0xff]  ;;  %v1211_v38 = vld [vmem:[%s1996_s4 + $0x48] sm:$0xff] }
  0x10   :  { %1333 = vmatmul.mubr.msk.f32.vlgmr.msra.gmra.mrb[0].mxu0 %vm58_vm0, %v37_v10  ;;  %1479 = vmatpush3.bf16.msra.mxu1 %v1476_v27  ;;  %v1780_v39 = vpack.c.bf16 %v1211_v38, %v1210_v37  ;;  %v1786_v40 = vld [vmem:[%s1994_s2] ss:$0 sm:$0xff]  ;;  %v1219_v37 = vld [vmem:[%s1996_s4 + $0x68] sm:$0xff]  ;;  %s1172_s2 = sshll.u32 %s1612_s16, 4  ;;  %s1173_s2 = int_to_ptr.vmem [resolvable:$true] %s1172_s2 }
  0x11   :  { %1335 = vmatprep.mubr.msk.f32.mxu0 %vm58_vm0, %v38_v11  ;;  %1481 = vmatprep.subr.bf16.mxu1 %v1480_v30  ;;  %v1791_v42 = vld [vmem:[%s1995_s3] ss:$0 sm:$0xff]  ;;  %s1585_s3 = scalar_lea.vmem %s1173_s2, 128  ;;  %p1590_p1 = scmp.lt.s32.totalorder %s1173_s2, %s1173_s2 }
  0x12   :  { %1469 = vmatprep.subr.bf16.mxu0 %v1468_v33  ;;  %p1586_p0 = scmp.ne.s32.totalorder %s1173_s2, %s1585_s3  ;;  %p1591_p2 = scmp.lt.s32.totalorder %s1585_s3, %s1585_s3 }
  0x13   :  { %1471 = vmatpush3.bf16.msra.mxu0 %v1468_v33 }
  0x14   :  { %1336 = vmatmul.mubr.msk.f32.gmra.mrb[2].mxu0 %vm58_vm0, %v39_v12  ;;  %1483 = vmatpush3.bf16.msra.mxu1 %v1480_v30  ;;  %p1592_p3 = por %p1591_p2, %p1590_p1 }
  0x15   :  { %1338 = vmatprep.mubr.msk.f32.mxu0 %vm58_vm0, %v40_v13  ;;  %1473 = vmatprep.subr.bf16.mxu0 %v1472_v36 }
  0x16   :  { %1485 = vmatprep.subr.bf16.mxu1 %v1780_v39  ;;  %p1593_p4 = pnand %p1592_p3, %p1586_p0 }
  0x17   :  { %1475 = vmatpush3.bf16.msra.mxu0 %v1472_v36  ;;  %v1218_v36 = vld [vmem:[%s1996_s4 + $0x60] sm:$0xff] }
  0x18   :  { %1339 = vmatmul.mubr.msk.f32.gmra.mrb[4].mxu0 %vm58_vm0, %v41_v14 }
  0x19   :  { %1341 = vmatprep.mubr.msk.f32.mxu0 %vm58_vm0, %v42_v15 }
  0x1c   :  { %1342 = vmatmul.mubr.msk.f32.gmra.mrb[6].mxu0 %vm58_vm0, %v43_v16 }
  0x1d   :  { %1344 = vmatprep.mubr.msk.f32.mxu0 %vm58_vm0, %v44_v17  ;;  %v1212_v17 = vld [vmem:[%s1996_s4 + $0x50] sm:$0xff] }
  0x20   :  { %1345 = vmatmul.mubr.msk.f32.gmra.mrb[8].mxu0 %vm58_vm0, %v45_v18  ;;  %v1213_v18 = vld [vmem:[%s1996_s4 + $0x58] sm:$0xff] }
  0x21   :  { %1347 = vmatprep.mubr.msk.f32.mxu0 %vm58_vm0, %v46_v19  ;;  %v1488_v30 = vpack.c.bf16 %v1213_v18, %v1212_v17 }
  0x24   :  { %1348 = vmatmul.mubr.msk.f32.gmra.mrb[10].mxu0 %vm58_vm0, %v47_v20 }
  0x25   :  { %1350 = vmatprep.mubr.msk.f32.mxu0 %vm58_vm0, %v48_v21 }
  0x28   :  { %1351 = vmatmul.mubr.msk.f32.gmra.mrb[12].mxu0 %vm58_vm0, %v49_v22 }
  0x29   :  { %1353 = vmatprep.mubr.msk.f32.mxu0 %vm58_vm0, %v50_v23 }
  0x2c   :  { %1354 = vmatmul.mubr.msk.f32.gmra.mrb[14].mxu0 %vm58_vm0, %v51_v24 }
  0xe3   :  { %v1334_v41 = vpop.f32.mrb[0].mxu0 }
  0xe4   :  { %v260_v43 = vmul.f32 %v1334_v41, %v1786_v40  ;;  %v173_v44 = vpop.f32.mrb[1].mxu0 }
  0xe5   :  { %v259_v45 = vmul.f32 %v1786_v40, %v173_v44 }
  0xe6   :  { %v283_v46 = vadd.f32 %v1791_v42, %v260_v43 }
  0xe7   :  { %v282_v47 = vadd.f32 %v1791_v42, %v259_v45  ;;  %v1337_v48 = vpop.f32.mrb[2].mxu0 }
  0xe8   :  { %v315_v49 = vmul.f32 0.70710677, %v283_v46  ;;  %v262_v50 = vmul.f32 %v1337_v48, %v1786_v40  ;;  %v183_v51 = vpop.f32.mrb[3].mxu0  ;;  %v299_v22 = vmul.f32 0.5, %v283_v46 }
  0xe9   :  { %v314_v52 = vmul.f32 0.70710677, %v282_v47  ;;  %v261_v53 = vmul.f32 %v1786_v40, %v183_v51  ;;  %v298_v20 = vmul.f32 0.5, %v282_v47 }
  0xea   :  { %1545 = verf.f32 %v315_v49  ;;  %v285_v54 = vadd.f32 %v1791_v42, %v262_v50 }
  0xeb   :  { %1547 = verf.f32 %v314_v52  ;;  %v284_v55 = vadd.f32 %v1791_v42, %v261_v53  ;;  %v1340_v56 = vpop.f32.mrb[4].mxu0  ;;  %v1856_v52 = vpack.c.bf16 %v1219_v37, %v1218_v36 }
  0xec   :  { %v317_v57 = vmul.f32 0.70710677, %v285_v54  ;;  %v264_v58 = vmul.f32 %v1340_v56, %v1786_v40  ;;  %v193_v59 = vpop.f32.mrb[5].mxu0  ;;  %v301_v44 = vmul.f32 0.5, %v285_v54 }
  0xed   :  { %v316_v60 = vmul.f32 0.70710677, %v284_v55  ;;  %v263_v61 = vmul.f32 %v1786_v40, %v193_v59  ;;  %v300_v38 = vmul.f32 0.5, %v284_v55 }
  0xee   :  { %1549 = verf.f32 %v317_v57  ;;  %v1804_v62 = vadd.f32 %v1791_v42, %v264_v58 }
  0xef   :  { %1551 = verf.f32 %v316_v60  ;;  %v1807_v63 = vadd.f32 %v1791_v42, %v263_v61  ;;  %v1343_v0 = vpop.f32.mrb[6].mxu0 }
  0xf0   :  { %v319_v1 = vmul.f32 0.70710677, %v1804_v62  ;;  %v266_v2 = vmul.f32 %v1343_v0, %v1786_v40  ;;  %v203_v3 = vpop.f32.mrb[7].mxu0 }
  0xf1   :  { %v318_v4 = vmul.f32 0.70710677, %v1807_v63  ;;  %v265_v5 = vmul.f32 %v1786_v40, %v203_v3  ;;  %v302_v58 = vmul.f32 0.5, %v1807_v63 }
  0xf2   :  { %1553 = verf.f32 %v319_v1  ;;  %v1814_v6 = vadd.f32 %v1791_v42, %v266_v2 }
  0xf3   :  { %1555 = verf.f32 %v318_v4  ;;  %v1817_v7 = vadd.f32 %v1791_v42, %v265_v5  ;;  %v1346_v8 = vpop.f32.mrb[8].mxu0 }
  0xf4   :  { %v1546_v9 = vpop.eup %1545  ;;  %v321_v10 = vmul.f32 0.70710677, %v1814_v6  ;;  %v268_v11 = vmul.f32 %v1346_v8, %v1786_v40  ;;  %v213_v12 = vpop.f32.mrb[9].mxu0 }
  0xf5   :  { %v1548_v13 = vpop.eup %1547  ;;  %v347_v14 = vadd.f32 1.0, %v1546_v9  ;;  %v320_v15 = vmul.f32 0.70710677, %v1817_v7  ;;  %v267_v16 = vmul.f32 %v1786_v40, %v213_v12 }
  0xf6   :  { %1557 = verf.f32 %v321_v10  ;;  %v1830_v19 = vadd.f32 %v1791_v42, %v268_v11  ;;  %v346_v21 = vadd.f32 1.0, %v1548_v13  ;;  %v304_v11 = vmul.f32 0.5, %v1817_v7 }
  0xf7   :  { %1559 = verf.f32 %v320_v15  ;;  %v1833_v23 = vadd.f32 %v1791_v42, %v267_v16  ;;  %v1349_v24 = vpop.f32.mrb[10].mxu0  ;;  %v363_v32 = vmul.f32 %v347_v14, %v299_v22  ;;  %v305_v14 = vmul.f32 0.5, %v1814_v6  ;;  %v1220_v6 = vld [vmem:[%s1996_s4 + $0x70] sm:$0xff] }
  0xf8   :  { %v1550_v25 = vpop.eup %1549  ;;  %v323_v26 = vmul.f32 0.70710677, %v1830_v19  ;;  %v270_v27 = vmul.f32 %v1349_v24, %v1786_v40  ;;  %v223_v28 = vpop.f32.mrb[11].mxu0  ;;  %v362_v29 = vmul.f32 %v346_v21, %v298_v20 }
  0xf9   :  { %v1552_v31 = vpop.eup %1551  ;;  %v349_v33 = vadd.f32 1.0, %v1550_v25  ;;  %v322_v34 = vmul.f32 0.70710677, %v1833_v23  ;;  %v269_v35 = vmul.f32 %v1786_v40, %v223_v28  ;;  %v306_v22 = vmul.f32 0.5, %v1833_v23 }
  0xfa   :  { %v348_v41 = vadd.f32 1.0, %v1552_v31  ;;  %1561 = verf.f32 %v323_v26  ;;  %v1846_v43 = vadd.f32 %v1791_v42, %v270_v27  ;;  %1378 = vmatprep.mubr.msk.f32.mxu1 %vm387_vm1, %v362_v29  ;;  %v307_v25 = vmul.f32 0.5, %v1830_v19 }
  0xfb   :  { %1563 = verf.f32 %v322_v34  ;;  %v1850_v45 = vadd.f32 %v1791_v42, %v269_v35  ;;  %v1352_v46 = vpop.f32.mrb[12].mxu0  ;;  %1379 = vmatmul.mubr.msk.f32.vlgmr.msra.gmra.mrb[0].mxu1 %vm387_vm1, %v363_v32  ;;  %v365_v54 = vmul.f32 %v349_v33, %v301_v44 }
  0xfc   :  { %v1554_v47 = vpop.eup %1553  ;;  %v364_v48 = vmul.f32 %v348_v41, %v300_v38  ;;  %v325_v49 = vmul.f32 0.70710677, %v1846_v43  ;;  %v272_v50 = vmul.f32 %v1352_v46, %v1786_v40  ;;  %v233_v51 = vpop.f32.mrb[13].mxu0  ;;  %1487 = vmatpush3.bf16.msra.mxu1 %v1780_v39  ;;  %v303_v39 = vmul.f32 0.5, %v1804_v62 }
  0xfd   :  { %v1556_v53 = vpop.eup %1555  ;;  %v351_v55 = vadd.f32 1.0, %v1554_v47  ;;  %v324_v56 = vmul.f32 0.70710677, %v1850_v45  ;;  %v271_v57 = vmul.f32 %v1786_v40, %v233_v51  ;;  %1489 = vmatprep.subr.bf16.mxu1 %v1488_v30  ;;  %v308_v31 = vmul.f32 0.5, %v1850_v45 }
  0xfe   :  { %v350_v59 = vadd.f32 1.0, %v1556_v53  ;;  %1565 = verf.f32 %v325_v49  ;;  %v1862_v60 = vadd.f32 %v1791_v42, %v272_v50  ;;  %1381 = vmatprep.mubr.msk.f32.mxu1 %vm387_vm1, %v364_v48  ;;  %v309_v33 = vmul.f32 0.5, %v1846_v43 }
  0xff   :  { %1567 = verf.f32 %v324_v56  ;;  %v294_v61 = vadd.f32 %v1791_v42, %v271_v57  ;;  %v1355_v0 = vpop.f32.mrb[14].mxu0  ;;  %1382 = vmatmul.mubr.msk.f32.gmra.mrb[2].mxu1 %vm387_vm1, %v365_v54  ;;  %v367_v8 = vmul.f32 %v351_v55, %v303_v39  ;;  %v1228_v54 = vld [vmem:[%s1999_s7 + $0x20] sm:$0xff]  ;;  %v1229_v55 = vld [vmem:[%s1999_s7 + $0x28] sm:$0xff]  ;;  %v1230_v39 = vld [vmem:[%s1999_s7 + $0x30] sm:$0xff] }
 0x100   :  { %v1558_v1 = vpop.eup %1557  ;;  %v366_v2 = vmul.f32 %v350_v59, %v302_v58  ;;  %v327_v3 = vmul.f32 0.70710677, %v1862_v60  ;;  %v274_v63 = vmul.f32 %v1355_v0, %v1786_v40  ;;  %v243_v4 = vpop.f32.mrb[15].mxu0  ;;  %1491 = vmatpush3.bf16.msra.mxu1 %v1488_v30  ;;  %v311_v44 = vmul.f32 0.5, %v1862_v60  ;;  %v836_v57 = vld [vmem:[%s1999_s7] sm:$0xff]  ;;  %v837_v58 = vld [vmem:[%s1999_s7 + $0x8] sm:$0xff] }
 0x101   :  { %v1560_v5 = vpop.eup %1559  ;;  %v353_v9 = vadd.f32 1.0, %v1558_v1  ;;  %v326_v10 = vmul.f32 0.70710677, %v294_v61  ;;  %v273_v62 = vmul.f32 %v1786_v40, %v243_v4  ;;  %1493 = vmatprep.subr.bf16.mxu1 %v1856_v52  ;;  %v310_v38 = vmul.f32 0.5, %v294_v61  ;;  %v1231_v61 = vld [vmem:[%s1999_s7 + $0x38] sm:$0xff]  ;;  %v838_v1 = vld [vmem:[%s1999_s7 + $0x10] sm:$0xff] }
 0x102   :  { %v352_v12 = vadd.f32 1.0, %v1560_v5  ;;  %1569 = verf.f32 %v327_v3  ;;  %v297_v13 = vadd.f32 %v1791_v42, %v274_v63  ;;  %1364 = vmatprep.mubr.msk.f32.mxu0 %vm387_vm1, %v366_v2  ;;  %v1501_v56 = vpack.c.bf16 %v1229_v55, %v1228_v54  ;;  %v839_v2 = vld [vmem:[%s1999_s7 + $0x18] sm:$0xff] }
 0x103   :  { %1571 = verf.f32 %v326_v10  ;;  %v296_v15 = vadd.f32 %v1791_v42, %v273_v62  ;;  %1365 = vmatmul.mubr.msk.f32.vlgmr.msra.gmra.mrb[16].mxu0 %vm387_vm1, %v367_v8  ;;  %v369_v20 = vmul.f32 %v353_v9, %v305_v14  ;;  %v1221_v42 = vld [vmem:[%s1996_s4 + $0x78] sm:$0xff]  ;;  %v1609_v59 = vmov 0.0|0.0   ;;  %v1226_v62 = vld [vmem:[%s1997_s5] ss:$0 sm:$0xff] }
 0x104   :  { %v1562_v16 = vpop.eup %1561  ;;  %v368_v17 = vmul.f32 %v352_v12, %v304_v11  ;;  %v329_v40 = vmul.f32 0.70710677, %v297_v13  ;;  %v1496_v30 = vpack.c.bf16 %v1221_v42, %v1220_v6  ;;  %v313_v51 = vmul.f32 0.5, %v297_v13  ;;  %1500 = vmatprep.subr.bf16.mxu0 %v1609_v59  ;;  %v1227_v13 = vld [vmem:[%s1998_s6] ss:$0 sm:$0xff] }
 0x105   :  { %v1564_v18 = vpop.eup %1563  ;;  %v355_v21 = vadd.f32 1.0, %v1562_v16  ;;  %v328_v7 = vmul.f32 0.70710677, %v296_v15  ;;  %v312_v49 = vmul.f32 0.5, %v296_v15  ;;  %v1507_v60 = vpack.c.bf16 %v837_v58, %v836_v57  ;;  %1502 = vmatpush3.bf16.msra.mxu0 %v1501_v56 }
 0x106   :  { %v354_v24 = vadd.f32 1.0, %v1564_v18  ;;  %1573 = verf.f32 %v329_v40  ;;  %1367 = vmatprep.mubr.msk.f32.mxu0 %vm387_vm1, %v368_v17  ;;  %1503 = vmatprep.subr.bf16.mxu0 %v1609_v59  ;;  %v1504_v0 = vpack.c.bf16 %v1231_v61, %v1230_v39  ;;  %v1510_v3 = vpack.c.bf16 %v839_v2, %v838_v1  ;;  %v1244_v61 = vld [vmem:[%s2000_s8] ss:$0 sm:$0xff] }
 0x107   :  { %1575 = verf.f32 %v328_v7  ;;  %1368 = vmatmul.mubr.msk.f32.gmra.mrb[18].mxu0 %vm387_vm1, %v369_v20  ;;  %v371_v28 = vmul.f32 %v355_v21, %v307_v25  ;;  %v1611_v63 = vmov 0.0   ;;  %v1245_v2 = vld [vmem:[%s2001_s9] ss:$0 sm:$0xff] }
 0x108   :  { %v1566_v26 = vpop.eup %1565  ;;  %v370_v27 = vmul.f32 %v354_v24, %v306_v22  ;;  %1420 = vmatprep.mubr.msk.f32.mxu0 %vm1610_vm2, %v1611_v63 }
 0x109   :  { %v1568_v23 = vpop.eup %1567  ;;  %v357_v29 = vadd.f32 1.0, %v1566_v26  ;;  %1505 = vmatpush3.bf16.msra.mxu0 %v1504_v0 }
 0x10a   :  { %v356_v32 = vadd.f32 1.0, %v1568_v23  ;;  %1392 = vmatprep.mubr.msk.f32.mxu1 %vm387_vm1, %v370_v27 }
 0x10b   :  { %1393 = vmatmul.mubr.msk.f32.vlgmr.msra.gmra.mrb[0].mxu1 %vm387_vm1, %v371_v28  ;;  %v373_v36 = vmul.f32 %v357_v29, %v309_v33  ;;  %v1234_v29 = vld [vmem:[%s1999_s7 + $0x40] sm:$0xff] }
 0x10c   :  { %v1570_v34 = vpop.eup %1569  ;;  %v372_v19 = vmul.f32 %v356_v32, %v308_v31  ;;  %1495 = vmatpush3.bf16.msra.mxu1 %v1856_v52 }
 0x10d   :  { %v1572_v35 = vpop.eup %1571  ;;  %v359_v37 = vadd.f32 1.0, %v1570_v34  ;;  %1497 = vmatprep.subr.bf16.mxu1 %v1496_v30 }
 0x10e   :  { %v358_v41 = vadd.f32 1.0, %v1572_v35  ;;  %1395 = vmatprep.mubr.msk.f32.mxu1 %vm387_vm1, %v372_v19 }
 0x10f   :  { %1396 = vmatmul.mubr.msk.f32.gmra.mrb[2].mxu1 %vm387_vm1, %v373_v36  ;;  %v375_v47 = vmul.f32 %v359_v37, %v311_v44 }
 0x110   :  { %v1574_v45 = vpop.eup %1573  ;;  %v374_v43 = vmul.f32 %v358_v41, %v310_v38  ;;  %1499 = vmatpush3.bf16.msra.mxu1 %v1496_v30  ;;  %v1235_v30 = vld [vmem:[%s1999_s7 + $0x48] sm:$0xff]  ;;  %v1236_v38 = vld [vmem:[%s1999_s7 + $0x50] sm:$0xff]  ;;  %v1237_v41 = vld [vmem:[%s1999_s7 + $0x58] sm:$0xff] }
 0x111   :  { %v1576_v46 = vpop.eup %1575  ;;  %v361_v48 = vadd.f32 1.0, %v1574_v45  ;;  %1506 = vmatprep.subr.bf16.mxu1 %v1609_v59  ;;  %v1513_v36 = vpack.c.bf16 %v1235_v30, %v1234_v29  ;;  %v1516_v45 = vpack.c.bf16 %v1237_v41, %v1236_v38 }
 0x112   :  { %v360_v50 = vadd.f32 1.0, %v1576_v46  ;;  %1406 = vmatprep.mubr.msk.f32.mxu1 %vm387_vm1, %v374_v43  ;;  %v1239_v46 = vld [vmem:[%s1999_s7 + $0x60] sm:$0xff] }
 0x113   :  { %1407 = vmatmul.mubr.msk.f32.vlgmr.msra.gmra.mrb[0].mxu1 %vm387_vm1, %v375_v47  ;;  %v377_v53 = vmul.f32 %v361_v48, %v313_v51  ;;  %v1240_v47 = vld [vmem:[%s1999_s7 + $0x68] sm:$0xff]  ;;  %v1241_v51 = vld [vmem:[%s1999_s7 + $0x70] sm:$0xff] }
 0x114   :  { %v376_v52 = vmul.f32 %v360_v50, %v312_v49  ;;  %1508 = vmatpush3.bf16.msra.mxu1 %v1507_v60  ;;  %v1519_v49 = vpack.c.bf16 %v1240_v47, %v1239_v46 }
 0x115   :  { %1509 = vmatprep.subr.bf16.mxu1 %v1609_v59 }
 0x116   :  { %1409 = vmatprep.mubr.msk.f32.mxu1 %vm387_vm1, %v376_v52  ;;  %v1242_v52 = vld [vmem:[%s1999_s7 + $0x78] sm:$0xff] }
 0x117   :  { %1410 = vmatmul.mubr.msk.f32.gmra.mrb[2].mxu1 %vm387_vm1, %v377_v53  ;;  %v1522_v54 = vpack.c.bf16 %v1242_v52, %v1241_v51 }
 0x118   :  { %1511 = vmatpush3.bf16.msra.mxu1 %v1510_v3  ;;  %1431 = vmatprep.mubr.msk.f32.mxu1 %vm1610_vm2, %v1611_v63 }
 0x119   :  { %1512 = vmatprep.subr.bf16.mxu1 %v1609_v59 }
 0x1d6   :  { %v1366_v4 = vpop.f32.mrb[16].mxu0 }
 0x1d7   :  { %v466_v5 = vpop.f32.mrb[17].mxu0 }
 0x1da   :  { %v1369_v8 = vpop.f32.mrb[18].mxu0 }
 0x1db   :  { %v476_v9 = vpop.f32.mrb[19].mxu0 }
 0x1e6   :  { %v1408_v10 = vpop.f32.mrb[0].mxu1 }
 0x1e7   :  { %v1524_v11 = vadd.f32 %v1408_v10, %v1366_v4  ;;  %v771_v12 = vpop.f32.mrb[1].mxu1 }
 0x1e8   :  { %v1525_v14 = vadd.f32 %v771_v12, %v466_v5 }
 0x1e9   :  { %v802_v15 = vmul.f32 %v1524_v11, %v1226_v62 }
 0x1ea   :  { %v801_v16 = vmul.f32 %v1525_v14, %v1226_v62  ;;  %v1411_v17 = vpop.f32.mrb[2].mxu1 }
 0x1eb   :  { %v813_v40 = vadd.f32 %v1227_v13, %v802_v15  ;;  %v1526_v18 = vadd.f32 %v1411_v17, %v1369_v8  ;;  %v781_v20 = vpop.f32.mrb[3].mxu1 }
 0x1ec   :  { %v812_v21 = vadd.f32 %v1227_v13, %v801_v16  ;;  %v1527_v7 = vadd.f32 %v781_v20, %v476_v9 }
 0x1ed   :  { %v821_v22 = vmul.f32 0.70710677, %v813_v40  ;;  %v804_v42 = vmul.f32 %v1526_v18, %v1226_v62  ;;  %v817_v32 = vmul.f32 0.5, %v813_v40 }
 0x1ee   :  { %v820_v24 = vmul.f32 0.70710677, %v812_v21  ;;  %v803_v6 = vmul.f32 %v1527_v7, %v1226_v62  ;;  %v816_v34 = vmul.f32 0.5, %v812_v21 }
 0x1ef   :  { %1577 = verf.f32 %v821_v22  ;;  %v815_v27 = vadd.f32 %v1227_v13, %v804_v42 }
 0x1f0   :  { %1579 = verf.f32 %v820_v24  ;;  %v814_v25 = vadd.f32 %v1227_v13, %v803_v6 }
 0x1f1   :  { %v823_v23 = vmul.f32 0.70710677, %v815_v27  ;;  %v819_v56 = vmul.f32 0.5, %v815_v27 }
 0x1f2   :  { %v822_v26 = vmul.f32 0.70710677, %v814_v25  ;;  %v818_v48 = vmul.f32 0.5, %v814_v25 }
 0x1f4   :  { %1581 = verf.f32 %v822_v26 }
 0x1f5   :  { %1583 = verf.f32 %v823_v23 }
 0x1f9   :  { %v1578_v28 = vpop.eup %1577 }
 0x1fa   :  { %v1580_v31 = vpop.eup %1579  ;;  %v829_v33 = vadd.f32 1.0, %v1578_v28 }
 0x1fb   :  { %v828_v19 = vadd.f32 1.0, %v1580_v31 }
 0x1fc   :  { %v833_v35 = vmul.f32 %v829_v33, %v817_v32 }
 0x1fd   :  { %v832_v37 = vmul.f32 %v828_v19, %v816_v34 }
 0x1fe   :  { %v1582_v44 = vpop.eup %1581  ;;  %1421 = vmatmul.mubr.msk.f32.vlgmr.msra.gmra.mrb[20].mxu0 %vm387_vm1, %v833_v35 }
 0x1ff   :  { %1432 = vmatmul.mubr.msk.f32.vlgmr.msra.gmra.mrb[4].mxu1 %vm387_vm1, %v832_v37  ;;  %v830_v43 = vadd.f32 1.0, %v1582_v44  ;;  %v1584_v53 = vpop.eup %1583 }
 0x200   :  { %1514 = vmatpush3.bf16.msra.mxu1 %v1513_v36  ;;  %1442 = vmatprep.mubr.msk.f32.mxu1 %vm1610_vm2, %v1611_v63  ;;  %v831_v55 = vadd.f32 1.0, %v1584_v53 }
 0x201   :  { %1515 = vmatprep.subr.bf16.mxu1 %v1609_v59  ;;  %v834_v50 = vmul.f32 %v830_v43, %v818_v48 }
 0x202   :  { %v835_v57 = vmul.f32 %v831_v55, %v819_v56 }
 0x204   :  { %1517 = vmatpush3.bf16.msra.mxu1 %v1516_v45 }
 0x205   :  { %1518 = vmatprep.subr.bf16.mxu1 %v1609_v59 }
 0x207   :  { %1443 = vmatmul.mubr.msk.f32.vlgmr.msra.gmra.mrb[4].mxu1 %vm387_vm1, %v834_v50 }
 0x208   :  { %1520 = vmatpush3.bf16.msra.mxu1 %v1519_v49  ;;  %1453 = vmatprep.mubr.msk.f32.mxu1 %vm1610_vm2, %v1611_v63 }
 0x209   :  { %1521 = vmatprep.subr.bf16.mxu1 %v1609_v59 }
 0x20c   :  { %1523 = vmatpush3.bf16.msra.mxu1 %v1522_v54 }
 0x20f   :  { %1454 = vmatmul.mubr.msk.f32.vlgmr.msra.gmra.mrb[4].mxu1 %vm387_vm1, %v835_v57 }
 0x2d1   :  { %v914_v58 = vpop.f32.mrb[20].mxu0 }
 0x2d2   :  { %v1422_v60 = vpop.f32.mrb[21].mxu0 }
 0x2e2   :  { %v1144_v39 = vpop.f32.mrb[4].mxu1 }
 0x2e3   :  { %v1528_v0 = vadd.f32 %v1144_v39, %v914_v58  ;;  %v1455_v1 = vpop.f32.mrb[5].mxu1 }
 0x2e5   :  { %v1156_v59 = vmul.f32 %v1528_v0, %v1244_v61 }
 0x2e7   :  { %v1164_v3 = vadd.f32 %v1245_v2, %v1156_v59 }
 0x2e9   :  { %1165 = vst [vmem:[#allocation2] sm:$0xff] %v1164_v3 }
 0x2ea   :  { %1596 = shalt.err (!%p1593_p4)
}
 0x2eb   :  { %s1597_s18 = scalar_lea.hbm %s2002_s10, 128 }
 0x2ec   :  { %p1598_p5 = scmp.ne.s32.totalorder %s2002_s10, %s1597_s18  ;;  %p1601_p6 = scmp.lt.u32.totalorder %s1597_s18, %s2002_s10 }
 0x2ee   :  { %p1603_p7 = pnand %p1601_p6, %p1598_p5 }
 0x2f0   :  { %1606 = shalt.err (!%p1603_p7)
}
 0x2f1   :  { %1175 = dma.vmem_to_hbm [thread:$0]  %s1173_s2, 128, %s2002_s10, [#allocation3]  }
 0x2f2   :  { %1607 = dma.done.wait [#allocation3], 128  }
 0x2f3   :  { %1608 = vsyncadd [#allocation3], 4294967168 }
 0x2f4   :  { %1179 = vsyncpa [#allocation3], 1 }

</bundles_post_ra>
